<compile_context>
chip_gen: v7x
topology: tpu7x:2x2x1
jax: 0.10.0
libtpu: 0.0.40
codegen_flags: <defaults>
</compile_context>

<pallas_src>
import jax
import jax.numpy as jnp
from jax.experimental import pallas as pl
from jax.experimental.pallas import tpu as pltpu


def actor_kernel(x_ref, w1_ref, b1_ref, w3_ref, b3_ref, out_ref):
    # fc1 on the single live row (M=1 MXU matmul, f32 accumulation) + ReLU.
    h0 = jnp.maximum(
        jnp.dot(x_ref[...], w1_ref[...], preferred_element_type=jnp.float32)
        + b1_ref[...],
        0.0,
    )
    # NOTE: PyTorch applies ReLU a second time after the row-0 view; it is a
    # numerical no-op on already-ReLU'd values, so it is intentionally omitted.

    # fc3
    logits = (
        jnp.dot(h0, w3_ref[...], preferred_element_type=jnp.float32) + b3_ref[...]
    )

    # Numerically stable softmax over the last (lane) dim.
    m = jnp.max(logits, axis=-1, keepdims=True)
    e = jnp.exp(logits - m)
    out_ref[...] = e / jnp.sum(e, axis=-1, keepdims=True)


def actor_forward(x, w1, b1, w3, b3):
    """Single forward pass matching the PyTorch module: returns (1, action_dim)."""
    state_dim, hidden = w1.shape
    action_dim = w3.shape[1]

    # view(-1, 1, 64)[0] semantics: only row 0 of the batch is ever used, so
    # slice it in the wrapper and never DMA / compute the dead rows.
    x_row = x[:1, :]

    vmem = pltpu.MemorySpace.VMEM
    flops = 2 * (state_dim * hidden + hidden * action_dim)
    bytes_accessed = 4 * (
        x_row.size + w1.size + b1.size + w3.size + b3.size + action_dim
    )

    return pl.pallas_call(
        actor_kernel,
        out_shape=jax.ShapeDtypeStruct((1, action_dim), jnp.float32),
        in_specs=[pl.BlockSpec(memory_space=vmem)] * 5,
        out_specs=pl.BlockSpec(memory_space=vmem),
        cost_estimate=pl.CostEstimate(
            flops=flops,
            transcendentals=action_dim,
            bytes_accessed=bytes_accessed,
        ),
    )(x_row, w1, b1, w3, b3)


def actor_batched_kernel(x_ref, w1_ref, b1_ref, w3_ref, b3_ref, out_ref):
    # Each row is an independent Actor evaluation (single-state forward).
    h = jnp.maximum(
        jnp.dot(x_ref[...], w1_ref[...], preferred_element_type=jnp.float32)
        + b1_ref[...],
        0.0,
    )
    logits = (
        jnp.dot(h, w3_ref[...], preferred_element_type=jnp.float32) + b3_ref[...]
    )
    m = jnp.max(logits, axis=-1, keepdims=True)
    e = jnp.exp(logits - m)
    out_ref[...] = e / jnp.sum(e, axis=-1, keepdims=True)


def actor_forward_batched(states, w1, b1, w3, b3, *, tile_a=8):
    """Many independent Actor evaluations in ONE pallas_call.

    `states` is (num_actors, state_dim); each row is a single-state forward of
    the PyTorch module (for a 1-row input the row-0 view is the identity).
    The grid axis is marked "parallel" so v7x's two TensorCores split the work
    and launch overhead is amortized across the rollout.
    """
    num_actors, state_dim = states.shape
    hidden = w1.shape[1]
    action_dim = w3.shape[1]
    assert num_actors % tile_a == 0, "num_actors must be a multiple of tile_a"

    flops = 2 * num_actors * (state_dim * hidden + hidden * action_dim)
    bytes_accessed = 4 * (
        states.size + w1.size + b1.size + w3.size + b3.size
        + num_actors * action_dim
    )

    return pl.pallas_call(
        actor_batched_kernel,
        out_shape=jax.ShapeDtypeStruct((num_actors, action_dim), jnp.float32),
        grid_spec=pltpu.PrefetchScalarGridSpec(
            num_scalar_prefetch=0,
            grid=(num_actors // tile_a,),
            in_specs=[
                pl.BlockSpec((tile_a, state_dim), lambda i: (i, 0)),
                pl.BlockSpec((state_dim, hidden), lambda i: (0, 0)),
                pl.BlockSpec((1, hidden), lambda i: (0, 0)),
                pl.BlockSpec((hidden, action_dim), lambda i: (0, 0)),
                pl.BlockSpec((1, action_dim), lambda i: (0, 0)),
            ],
            out_specs=pl.BlockSpec((tile_a, action_dim), lambda i: (i, 0)),
        ),
        compiler_params=pltpu.CompilerParams(
            dimension_semantics=("parallel",),
        ),
        cost_estimate=pl.CostEstimate(
            flops=flops,
            transcendentals=num_actors * action_dim,
            bytes_accessed=bytes_accessed,
        ),
    )(states, w1, b1, w3, b3)


def actor_forward_ref(x, w1, b1, w3, b3):
    """Pure-JAX reference (mirrors the PyTorch forward)."""
    h = jnp.maximum(x @ w1 + b1, 0.0)
    h0 = jnp.maximum(h[0:1, :], 0.0)
    logits = h0 @ w3 + b3
    return jax.nn.softmax(logits, axis=-1)


if __name__ == "__main__":
    batch, state_dim, hidden, action_dim = 8, 32, 64, 8

    key = jax.random.PRNGKey(0)
    k1, k2, k3, k4, kx, kb = jax.random.split(key, 6)

    # Deterministic, PyTorch-Linear-style uniform init (bound = 1/sqrt(fan_in)).
    b1_bound = 1.0 / (state_dim ** 0.5)
    w1 = jax.random.uniform(k1, (state_dim, hidden), jnp.float32, -b1_bound, b1_bound)
    b1 = jax.random.uniform(k2, (1, hidden), jnp.float32, -b1_bound, b1_bound)

    b3_bound = 1.0 / (hidden ** 0.5)
    w3 = jax.random.uniform(k3, (hidden, action_dim), jnp.float32, -b3_bound, b3_bound)
    b3 = jax.random.uniform(k4, (1, action_dim), jnp.float32, -b3_bound, b3_bound)

    # TODO(synk): self.fc2 = nn.GRU(64, 64, 2) is declared in __init__ but never
    # invoked in forward(), so no GRU parameters/compute are instantiated here.

    x = jax.random.normal(kx, (batch, state_dim), dtype=jnp.float32)

    # --- Single forward (matches the PyTorch module exactly) ---
    out = actor_forward(x, w1, b1, w3, b3)
    out = jax.block_until_ready(out)

    ref = actor_forward_ref(x, w1, b1, w3, b3)
    assert out.shape == (1, action_dim)
    assert jnp.allclose(out, ref, atol=1e-5, rtol=1e-5)
    assert jnp.allclose(jnp.sum(out, axis=-1), 1.0, atol=1e-5)

    # --- Batched independent actor evaluations (parallel grid axis) ---
    num_actors = 16
    states = jax.random.normal(kb, (num_actors, state_dim), dtype=jnp.float32)
    out_b = jax.block_until_ready(actor_forward_batched(states, w1, b1, w3, b3))
    ref_b = jax.nn.softmax(jnp.maximum(states @ w1 + b1, 0.0) @ w3 + b3, axis=-1)
    assert out_b.shape == (num_actors, action_dim)
    assert jnp.allclose(out_b, ref_b, atol=1e-5, rtol=1e-5)
    assert jnp.allclose(jnp.sum(out_b, axis=-1), 1.0, atol=1e-5)

    print("KERNEL_OK")
</pallas_src>

<mosaic_0001>
module attributes {stable_mosaic.version = 11 : i64} {
  func.func @actor_kernel(%arg0: memref<1x32xf32, #tpu.memory_space<vmem>>, %arg1: memref<32x64xf32, #tpu.memory_space<vmem>>, %arg2: memref<1x64xf32, #tpu.memory_space<vmem>>, %arg3: memref<64x8xf32, #tpu.memory_space<vmem>>, %arg4: memref<1x8xf32, #tpu.memory_space<vmem>>, %arg5: memref<1x8xf32, #tpu.memory_space<vmem>>) attributes {dimension_semantics = [], scalar_prefetch = 0 : i64, scratch_operands = 0 : i64, tpu.core_type = #tpu.core_type<tc>} {
    %c0 = arith.constant 0 : index
    %c0_0 = arith.constant 0 : index
    %0 = vector.load %arg0[%c0, %c0_0] : memref<1x32xf32, #tpu.memory_space<vmem>>, vector<1x32xf32>
    %c0_1 = arith.constant 0 : index
    %c0_2 = arith.constant 0 : index
    %1 = vector.load %arg1[%c0_1, %c0_2] : memref<32x64xf32, #tpu.memory_space<vmem>>, vector<32x64xf32>
    %cst = arith.constant dense<0.000000e+00> : vector<1x64xf32>
    %2 = tpu.matmul %0, %1, %cst {dimension_numbers = #tpu.dot_dimension_numbers<[1], [0], [0], [1], [0, 0, 1, 1], [], []>} : vector<1x32xf32>, vector<32x64xf32>, vector<1x64xf32> -> vector<1x64xf32>
    %c0_3 = arith.constant 0 : index
    %c0_4 = arith.constant 0 : index
    %3 = vector.load %arg2[%c0_3, %c0_4] : memref<1x64xf32, #tpu.memory_space<vmem>>, vector<1x64xf32>
    %4 = arith.addf %2, %3 : vector<1x64xf32>
    %cst_5 = arith.constant 0.000000e+00 : f32
    %5 = vector.broadcast %cst_5 : f32 to vector<1x64xf32>
    %6 = arith.maximumf %4, %5 : vector<1x64xf32>
    %c0_6 = arith.constant 0 : index
    %c0_7 = arith.constant 0 : index
    %7 = vector.load %arg3[%c0_6, %c0_7] : memref<64x8xf32, #tpu.memory_space<vmem>>, vector<64x8xf32>
    %cst_8 = arith.constant dense<0.000000e+00> : vector<1x8xf32>
    %8 = tpu.matmul %6, %7, %cst_8 {dimension_numbers = #tpu.dot_dimension_numbers<[1], [0], [0], [1], [0, 0, 1, 1], [], []>} : vector<1x64xf32>, vector<64x8xf32>, vector<1x8xf32> -> vector<1x8xf32>
    %c0_9 = arith.constant 0 : index
    %c0_10 = arith.constant 0 : index
    %9 = vector.load %arg4[%c0_9, %c0_10] : memref<1x8xf32, #tpu.memory_space<vmem>>, vector<1x8xf32>
    %10 = arith.addf %8, %9 : vector<1x8xf32>
    %cst_11 = arith.constant dense<0xFF800000> : vector<1xf32>
    %11 = vector.multi_reduction <maximumf>, %10, %cst_11 [1] : vector<1x8xf32> to vector<1xf32>
    %12 = vector.shape_cast %11 : vector<1xf32> to vector<1x1xf32>
    %13 = vector.broadcast %12 : vector<1x1xf32> to vector<1x8xf32>
    %14 = arith.subf %10, %13 : vector<1x8xf32>
    %15 = math.exp %14 : vector<1x8xf32>
    %cst_12 = arith.constant dense<0.000000e+00> : vector<1xf32>
    %16 = vector.multi_reduction <add>, %15, %cst_12 [1] : vector<1x8xf32> to vector<1xf32>
    %17 = vector.shape_cast %16 : vector<1xf32> to vector<1x1xf32>
    %18 = vector.broadcast %17 : vector<1x1xf32> to vector<1x8xf32>
    %19 = arith.divf %15, %18 : vector<1x8xf32>
    %c0_13 = arith.constant 0 : index
    %c0_14 = arith.constant 0 : index
    %20 = vector.load %arg5[%c0_13, %c0_14] : memref<1x8xf32, #tpu.memory_space<vmem>>, vector<1x8xf32>
    tpu.vector_store %arg5[%c0_13, %c0_14], %19 {strides = array<i32>} : memref<1x8xf32, #tpu.memory_space<vmem>>, vector<1x8xf32>,
    return
  }
}

</mosaic_0001>

<bundles_post_ra>
// kernel: tpu_custom_call.1
= control target key start
LH: loop header
LB: loop body
LE: loop exit
PB: predicated region body
PF: predicated region fallthrough
CT: control target
= control target key end

     0   :  { %v308_v3 = vmov 0.0|0.0   ;;  %vm309_vm0 = vmmov 0   ;;  %v310_v6 = vmov 0.0   ;;  %s402_s0 = inlined_call_operand.vmem [shape: f32[1,32], index: 0, kind: input, shape index: {}]   ;;  %s403_s1 = inlined_call_operand.vmem [shape: f32[32,64], index: 1, kind: input, shape index: {}]   ;;  %s404_s2 = inlined_call_operand.vmem [shape: f32[1,64], index: 2, kind: input, shape index: {}]   ;;  %s405_s3 = inlined_call_operand.vmem [shape: f32[64,8], index: 3, kind: input, shape index: {}]   ;;  %s406_s4 = inlined_call_operand.vmem [shape: f32[1,8], index: 4, kind: input, shape index: {}]   ;;  %s407_s5 = inlined_call_operand.hbm [shape: f32[1,8], index: 5, kind: output, shape index: {}]  }
   0x1   :  { %v22_v0 = vld [vmem:[%s403_s1] sm:$0xff]  ;;  %v23_v1 = vld [vmem:[%s403_s1 + $0x8] sm:$0xff]  ;;  %v24_v2 = vld [vmem:[%s403_s1 + $0x10] sm:$0xff]  ;;  %258 = vmatprep.subr.bf16.mxu0 %v308_v3  ;;  %236 = vmatprep.mubr.msk.f32.mxu0 %vm309_vm0, %v310_v6 }
   0x2   :  { %v259_v4 = vpack.c.bf16 %v23_v1, %v22_v0  ;;  %v25_v5 = vld [vmem:[%s403_s1 + $0x18] sm:$0xff]  ;;  %v102_v7 = vld [vmem:[%s405_s3] sm:$0xff]  ;;  %264 = vmatprep.subr.bf16.mxu1 %v308_v3  ;;  %v103_v8 = vld [vmem:[%s405_s3 + $0x8] sm:$0xff]  ;;  %255 = vmatprep.mubr.msk.f32.mxu1 %vm309_vm0, %v310_v6 }
   0x3   :  { %v104_v9 = vld [vmem:[%s405_s3 + $0x10] sm:$0xff]  ;;  %v105_v10 = vld [vmem:[%s405_s3 + $0x18] sm:$0xff]  ;;  %v262_v11 = vpack.c.bf16 %v25_v5, %v24_v2  ;;  %v265_v12 = vpack.c.bf16 %v103_v8, %v102_v7 }
   0x4   :  { %260 = vmatpush3.bf16.msra.mxu0 %v259_v4 }
   0x5   :  { %261 = vmatprep.subr.bf16.mxu0 %v308_v3 }
   0x6   :  { %10 = vsyncpa [#allocation3], 0  ;;  %266 = vmatpush3.bf16.msra.mxu1 %v265_v12  ;;  %v268_v13 = vpack.c.bf16 %v105_v10, %v104_v9  ;;  %v106_v14 = vld [vmem:[%s405_s3 + $0x20] sm:$0xff]  ;;  %v107_v15 = vld [vmem:[%s405_s3 + $0x28] sm:$0xff]  ;;  %vm27_vm1 = vcmask 261120   ;;  %vm111_vm2 = vcmask 523264  }
   0x7   :  { %267 = vmatprep.subr.bf16.mxu1 %v308_v3  ;;  %v21_v16 = vld [vmem:[%s402_s0] sm:$0x1]  ;;  %v271_v17 = vpack.c.bf16 %v107_v15, %v106_v14  ;;  %v108_v18 = vld [vmem:[%s405_s3 + $0x30] sm:$0xff]  ;;  %v109_v19 = vld [vmem:[%s405_s3 + $0x38] sm:$0xff]  ;;  %vm185_vm3 = vcmask 57344  }
   0x8   :  { %263 = vmatpush3.bf16.msra.mxu0 %v262_v11  ;;  %v274_v20 = vpack.c.bf16 %v109_v19, %v108_v18  ;;  %v26_v21 = vld [vmem:[%s404_s2] sm:$0x1]  ;;  %s311_s2 = smov [#allocation2]  }
   0x9   :  { %v110_v26 = vld [vmem:[%s406_s4] sm:$0x1]  ;;  %s204_s3 = sshll.u32 %s311_s2, 4  ;;  %s205_s3 = int_to_ptr.vmem [resolvable:$true] %s204_s3 }
   0xa   :  { %269 = vmatpush3.bf16.msra.mxu1 %v268_v13  ;;  %s284_s4 = scalar_lea.vmem %s205_s3, 16  ;;  %s288_s21 = scalar_lea.vmem %s205_s3, 32 }
   0xb   :  { %237 = vmatmul.mubr.msk.f32.vlgmr.msra.gmra.mrb[0].mxu0 %vm27_vm1, %v21_v16  ;;  %270 = vmatprep.subr.bf16.mxu1 %v308_v3  ;;  %p285_p0 = scmp.ne.s32.totalorder %s205_s3, %s284_s4  ;;  %p289_p1 = scmp.lt.s32.totalorder %s205_s3, %s205_s3 }
   0xc   :  { %p290_p2 = scmp.lt.s32.totalorder %s288_s21, %s284_s4 }
   0xe   :  { %272 = vmatpush3.bf16.msra.mxu1 %v271_v17  ;;  %p291_p3 = por %p290_p2, %p289_p1 }
   0xf   :  { %273 = vmatprep.subr.bf16.mxu1 %v308_v3 }
  0x10   :  { %p292_p4 = pnand %p291_p3, %p285_p0 }
  0x12   :  { %275 = vmatpush3.bf16.msra.mxu1 %v274_v20 }
  0xde   :  { %v97_v22 = vpop.f32.mrb[0].mxu0 }
  0xdf   :  { %v98_v23 = vadd.f32 %v97_v22, %v26_v21  ;;  %v238_v24 = vpop.f32.mrb[1].mxu0 }
  0xe1   :  { %v101_v25 = vmax.f32 %v98_v23, 0.0 }
  0xe3   :  { %256 = vmatmul.mubr.msk.f32.vlgmr.msra.gmra.mrb[0].mxu1 %vm111_vm2, %v101_v25 }
 0x1b6   :  { %v181_v27 = vpop.f32.mrb[0].mxu1 }
 0x1b7   :  { %v182_v28 = vadd.f32 %v181_v27, %v110_v26  ;;  %v257_v29 = vpop.f32.mrb[1].mxu1 }
 0x1b9   :  { %v186_v30 = vsel %vm185_vm3, %v182_v28, -inf }
 0x1ba   :  { %187 = vmax.xlane.f32.xlu0 %v186_v30 }
 0x247   :  { %v188_v31 = vpop.xlane.xlu0 %187 }
 0x248   :  { %v189_v32 = vsub.f32 %v182_v28, %v188_v31 }
 0x24a   :  { %v190_v33 = vmul.f32 1.442695, %v189_v32 }
 0x24c   :  { %280 = vpow2.f32 %v190_v33 }
 0x256   :  { %v281_v34 = vpop.eup %280 }
 0x257   :  { %v192_v35 = vsel %vm185_vm3, %v281_v34, 0.0 }
 0x258   :  { %193 = vadd.xlane.f32.xlu0 %v192_v35 }
 0x2e5   :  { %v194_v36 = vpop.xlane.xlu0 %193 }
 0x2e6   :  { %282 = vrcp.f32 %v194_v36 }
 0x2f0   :  { %v283_v37 = vpop.eup %282 }
 0x2f1   :  { %v196_v38 = vmul.f32 %v283_v37, %v281_v34 }
 0x2f3   :  { %197 = vst.msk [vmem:[#allocation2] sm:$0x1] %vm185_vm3, %v196_v38 }
 0x2f4   :  { %295 = shalt.err (!%p292_p4)
}
 0x2f5   :  { %s296_s24 = scalar_lea.hbm %s407_s5, 16 }
 0x2f6   :  { %p297_p5 = scmp.ne.s32.totalorder %s407_s5, %s296_s24  ;;  %p300_p6 = scmp.lt.u32.totalorder %s296_s24, %s407_s5 }
 0x2f8   :  { %p302_p7 = pnand %p300_p6, %p297_p5 }
 0x2fa   :  { %305 = shalt.err (!%p302_p7)
}
 0x2fb   :  { %207 = dma.vmem_to_hbm [thread:$0]  %s205_s3, 16, %s407_s5, [#allocation3]  }
 0x2fc   :  { %306 = dma.done.wait [#allocation3], 16  }
 0x2fd   :  { %307 = vsyncadd [#allocation3], 4294967280 }
 0x2fe   :  { %211 = vsyncpa [#allocation3], 1 }

</bundles_post_ra>
